<compile_context>
chip_gen: v7x
topology: tpu7x:2x2x1
jax: 0.10.0
libtpu: 0.0.40
codegen_flags: <defaults>
</compile_context>

<pallas_src>
import functools

import jax
import jax.numpy as jnp
from jax.experimental import pallas as pl
from jax.experimental.pallas import tpu as pltpu

_BETA = 0.11  # smooth-L1 transition point used by RegressionLoss


def _loss_kernel(cls_ref, tgt_ref, mask_ref, diff_ref, out_ref,
                 *, n_valid, n_inner):
    """Per-lane partial sums, accumulated straight into the resident out block.

    out_ref rows: 0 = sum(CE * valid), 1 = sum(valid),
                  2 = sum(smoothL1_rowsum * mask), 3 = sum(mask).
    """
    o = pl.program_id(0)   # "parallel" outer chunk (megacore split on 2-TC parts)
    j = pl.program_id(1)   # "arbitrary" reduction axis

    @pl.when(j == 0)
    def _():
        out_ref[...] = jnp.zeros_like(out_ref)

    tn = mask_ref.shape[1]

    # Logical-position tail mask: the partial last block (and any clamped
    # duplicate block) reads garbage lanes; those are blocked with `where`
    # on the (1, TN) results below — never with a multiply.
    block_id = o * n_inner + j                                   # un-clamped
    col = jax.lax.broadcasted_iota(jnp.int32, (1, tn), 1)
    in_range = (block_id * tn + col) < n_valid                   # (1, TN) bool

    mask = jnp.where(in_range, mask_ref[...].astype(jnp.float32), 0.0)  # (1, TN)
    valid = mask > 0                                             # (1, TN) bool

    # --- classification CE: full-height ops + axis-0 (sublane) reductions.
    logits = cls_ref[...].astype(jnp.float32)                    # (C, TN)
    m = jnp.max(logits, axis=0, keepdims=True)                   # (1, TN)
    sexp = jnp.sum(jnp.exp(logits - m), axis=0, keepdims=True)   # (1, TN)
    cls_iota = jax.lax.broadcasted_iota(jnp.int32, logits.shape, 0)
    # NOTE: labels are assumed to lie in [0, C); an ignore/out-of-range label
    # would silently contribute logsumexp(logits) instead of raising like
    # torch.nn.functional.cross_entropy would.
    tgt_logit = jnp.sum(jnp.where(cls_iota == tgt_ref[...], logits, 0.0),
                        axis=0, keepdims=True)                   # (1, TN)
    ce = (m + jnp.log(sexp)) - tgt_logit                         # (1, TN)

    # --- regression: smooth-L1 (beta = 0.11) of the precomputed |pred - tgt|.
    d = diff_ref[...].astype(jnp.float32)                        # (7, TN)
    sl1 = jnp.where(d < _BETA, (0.5 / _BETA) * d * d, d - 0.5 * _BETA)
    s = jnp.sum(sl1, axis=0, keepdims=True)                      # (1, TN)

    # Accumulate directly into the grid-resident output block (no scratch).
    out_ref[0:1, :] += jnp.where(valid, ce, 0.0)                 # CE numerator
    out_ref[1:2, :] += valid.astype(jnp.float32)                 # CE denominator
    out_ref[2:3, :] += jnp.where(in_range, s, 0.0) * mask        # reg numerator
    out_ref[3:4, :] += mask                                      # reg denominator


@functools.partial(jax.jit, static_argnames=("reg_weight",))
def radar_pillars_loss(cls_preds, reg_preds, cls_targets, reg_targets,
                       reg_masks, reg_weight=1.0):
    """JAX/Pallas equivalent of RadarPillarsLoss.forward."""
    B, H, W, C = cls_preds.shape
    NB = reg_preds.shape[-1]            # 7 box params
    N = B * H * W

    # Lane-dense layout: positions on the 128-lane axis, tiny class/box dims
    # on sublanes.  The abs-diff is taken BEFORE the transpose so XLA fuses
    # the elementwise op into the transpose copy and only one 7-wide stream
    # is materialized / read by the kernel (instead of preds + targets).
    cls_t = jnp.transpose(cls_preds.reshape(N, C))                       # (C, N)
    diff_t = jnp.transpose(
        jnp.abs(reg_preds.reshape(N, NB) - reg_targets.reshape(N, NB)))  # (NB, N)
    tgt2d = cls_targets.reshape(1, N).astype(jnp.int32)                  # (1, N)
    mask2d = reg_masks.reshape(1, N)
    if not jnp.issubdtype(mask2d.dtype, jnp.floating):
        mask2d = mask2d.astype(jnp.float32)

    # Large tiles so per-step DMA time dominates the ~0.35us fixed step
    # overhead; multiple of 128, tail handled by in-kernel masking (no pad).
    if N >= 128:
        TN = min(32768, (N // 128) * 128)
    else:
        TN = N
    n_blocks = pl.cdiv(N, TN)
    n_outer = 2 if n_blocks >= 2 else 1     # lets a 2-TC part split the work
    n_inner = pl.cdiv(n_blocks, n_outer)

    def lane_idx(o, j):
        # Clamp so the DMA never starts past the array; the kernel's logical
        # position mask zeroes any contribution from a clamped duplicate.
        return (0, jnp.minimum(o * n_inner + j, n_blocks - 1))

    kernel = functools.partial(_loss_kernel, n_valid=N, n_inner=n_inner)

    partials = pl.pallas_call(
        kernel,
        out_shape=jax.ShapeDtypeStruct((n_outer, 4, TN), jnp.float32),
        grid_spec=pltpu.PrefetchScalarGridSpec(
            num_scalar_prefetch=0,
            grid=(n_outer, n_inner),
            in_specs=[
                pl.BlockSpec((C, TN), lane_idx),      # logits        (C, N)
                pl.BlockSpec((1, TN), lane_idx),      # cls targets   (1, N)
                pl.BlockSpec((1, TN), lane_idx),      # reg masks     (1, N)
                pl.BlockSpec((NB, TN), lane_idx),     # |pred - tgt|  (NB, N)
            ],
            out_specs=pl.BlockSpec((None, 4, TN), lambda o, j: (o, 0, 0)),
        ),
        compiler_params=pltpu.CompilerParams(
            # TODO(synk): on v7x, verify with xprof that this axis really
            # splits across both TensorCores; if not, switch to
            # pltpu.CORE_PARALLEL (kept as portable "parallel" here).
            dimension_semantics=("parallel", "arbitrary"),
            vmem_limit_bytes=32 * 1024 * 1024),
    )(cls_t, tgt2d, mask2d, diff_t)

    # Tiny final reduction + divisions in plain JAX.
    sums = jnp.sum(partials, axis=(0, 2))                        # (4,)
    ce_sum, valid_cnt, reg_sum, mask_sum = sums[0], sums[1], sums[2], sums[3]

    cls_loss = jnp.where(valid_cnt > 0,
                         ce_sum / jnp.maximum(valid_cnt, 1.0),
                         jnp.float32(0.0))
    reg_loss = reg_sum / (mask_sum + 1e-6)
    # NOTE: the PyTorch module stores reg_weight but never applies it in
    # forward (total = cls + reg); mirrored exactly here.
    total_loss = cls_loss + reg_loss
    loss_dict = {"cls_loss": cls_loss, "reg_loss": reg_loss,
                 "total_loss": total_loss}
    return total_loss, loss_dict


def _ref_loss(cls_preds, reg_preds, cls_targets, reg_targets, reg_masks):
    """Pure-JAX reference of the PyTorch forward semantics."""
    B, H, W, C = cls_preds.shape
    NB = reg_preds.shape[-1]
    N = B * H * W
    logits = cls_preds.reshape(N, C).astype(jnp.float32)
    tgt = cls_targets.reshape(N).astype(jnp.int32)
    mask = reg_masks.reshape(N).astype(jnp.float32)
    valid = (mask > 0).astype(jnp.float32)

    logp = jax.nn.log_softmax(logits, axis=-1)
    ce = -jnp.take_along_axis(logp, tgt[:, None], axis=-1)[:, 0]
    cnt = jnp.sum(valid)
    cls_loss = jnp.where(cnt > 0, jnp.sum(ce * valid) / jnp.maximum(cnt, 1.0),
                         0.0)

    diff = jnp.abs(reg_preds.reshape(N, NB) - reg_targets.reshape(N, NB))
    sl1 = jnp.where(diff < _BETA, 0.5 * diff ** 2 / _BETA, diff - 0.5 * _BETA)
    m = mask[:, None]
    reg_loss = jnp.sum(sl1 * m) / (jnp.sum(m) + 1e-6)
    return cls_loss + reg_loss, cls_loss, reg_loss


if __name__ == "__main__":
    key = jax.random.PRNGKey(0)
    k1, k2, k3, k4, k5 = jax.random.split(key, 5)

    # N = 2*20*20 = 800: exercises 2 blocks, the parallel outer axis and the
    # in-kernel tail masking (800 is not a multiple of the 768-lane tile).
    B, H, W, NUM_CLASSES = 2, 20, 20, 4
    cls_preds = jax.random.normal(k1, (B, H, W, NUM_CLASSES), jnp.float32)
    reg_preds = jax.random.normal(k2, (B, H, W, 7), jnp.float32)
    cls_targets = jax.random.randint(k3, (B, H, W), 0, NUM_CLASSES, jnp.int32)
    reg_targets = jax.random.normal(k4, (B, H, W, 7), jnp.float32)
    reg_masks = (jax.random.uniform(k5, (B, H, W)) > 0.5).astype(jnp.float32)

    total, loss_dict = radar_pillars_loss(
        cls_preds, reg_preds, cls_targets, reg_targets, reg_masks,
        reg_weight=1.0)
    total = jax.block_until_ready(total)

    ref_total, ref_cls, ref_reg = _ref_loss(
        cls_preds, reg_preds, cls_targets, reg_targets, reg_masks)

    assert jnp.allclose(total, ref_total, rtol=1e-4, atol=1e-5), (
        float(total), float(ref_total))
    assert jnp.allclose(loss_dict["cls_loss"], ref_cls, rtol=1e-4, atol=1e-5)
    assert jnp.allclose(loss_dict["reg_loss"], ref_reg, rtol=1e-4, atol=1e-5)

    print("KERNEL_OK")
</pallas_src>

<mosaic_0001>
module attributes {stable_mosaic.version = 11 : i64} {
  func.func @_loss_kernel(%arg0: i32, %arg1: i32, %arg2: memref<4x768xf32, #tpu.memory_space<vmem>>, %arg3: memref<1x768xi32, #tpu.memory_space<vmem>>, %arg4: memref<1x768xf32, #tpu.memory_space<vmem>>, %arg5: memref<7x768xf32, #tpu.memory_space<vmem>>, %arg6: memref<1x4x768xf32, #tpu.memory_space<vmem>>) attributes {dimension_semantics = [#tpu.dimension_semantics<parallel>, #tpu.dimension_semantics<arbitrary>], iteration_bounds = array<i64: 2, 1>, scalar_prefetch = 0 : i64, scratch_operands = 0 : i64, tpu.core_type = #tpu.core_type<tc>, window_params = [{transform_indices = @transform_0, window_bounds = array<i64: 4, 768>}, {transform_indices = @transform_1, window_bounds = array<i64: 1, 768>}, {transform_indices = @transform_2, window_bounds = array<i64: 1, 768>}, {transform_indices = @transform_3, window_bounds = array<i64: 7, 768>}, {transform_indices = @transform_4, window_bounds = array<i64: 1, 4, 768>}]} {
    %c0_i32 = arith.constant 0 : i32
    %0 = arith.cmpi eq, %arg1, %c0_i32 : i32
    %1 = arith.extui %0 : i1 to i32
    %c0_i32_0 = arith.constant 0 : i32
    %2 = arith.cmpi ne, %1, %c0_i32_0 : i32
    scf.if %2 {
      %cst_40 = arith.constant 0.000000e+00 : f32
      %77 = vector.broadcast %cst_40 : f32 to vector<4x768xf32>
      %c0_41 = arith.constant 0 : index
      %c0_42 = arith.constant 0 : index
      %c0_43 = arith.constant 0 : index
      %78 = vector.load %arg6[%c0_41, %c0_42, %c0_43] : memref<1x4x768xf32, #tpu.memory_space<vmem>>, vector<1x4x768xf32>
      %79 = vector.shape_cast %78 : vector<1x4x768xf32> to vector<4x768xf32>
      %80 = vector.shape_cast %77 : vector<4x768xf32> to vector<1x4x768xf32>
      tpu.vector_store %arg6[%c0_41, %c0_42, %c0_43], %80 {strides = array<i32>} : memref<1x4x768xf32, #tpu.memory_space<vmem>>, vector<1x4x768xf32>,
    } else {
    }
    %c1_i32 = arith.constant 1 : i32
    %3 = arith.muli %arg0, %c1_i32 : i32
    %4 = arith.addi %3, %arg1 : i32
    %5 = tpu.iota {dimensions = array<i32: 1>} : vector<1x768xi32>
    %c768_i32 = arith.constant 768 : i32
    %6 = arith.muli %4, %c768_i32 : i32
    %7 = vector.broadcast %6 : i32 to vector<1x768xi32>
    %8 = arith.addi %7, %5 : vector<1x768xi32>
    %c800_i32 = arith.constant 800 : i32
    %9 = vector.broadcast %c800_i32 : i32 to vector<1x768xi32>
    %10 = arith.cmpi slt, %8, %9 : vector<1x768xi32>
    %c0 = arith.constant 0 : index
    %c0_1 = arith.constant 0 : index
    %11 = vector.load %arg4[%c0, %c0_1] : memref<1x768xf32, #tpu.memory_space<vmem>>, vector<1x768xf32>
    %cst = arith.constant 0.000000e+00 : f32
    %12 = vector.broadcast %cst : f32 to vector<1x768xf32>
    %13 = arith.select %10, %11, %12 : vector<1x768xi1>, vector<1x768xf32>
    %cst_2 = arith.constant 0.000000e+00 : f32
    %14 = vector.broadcast %cst_2 : f32 to vector<1x768xf32>
    %15 = arith.cmpf ogt, %13, %14 : vector<1x768xf32>
    %c0_3 = arith.constant 0 : index
    %c0_4 = arith.constant 0 : index
    %16 = vector.load %arg2[%c0_3, %c0_4] : memref<4x768xf32, #tpu.memory_space<vmem>>, vector<4x768xf32>
    %cst_5 = arith.constant dense<0xFF800000> : vector<768xf32>
    %17 = vector.multi_reduction <maximumf>, %16, %cst_5 [0] : vector<4x768xf32> to vector<768xf32>
    %18 = vector.shape_cast %17 : vector<768xf32> to vector<1x768xf32>
    %19 = vector.broadcast %18 : vector<1x768xf32> to vector<4x768xf32>
    %20 = arith.subf %16, %19 : vector<4x768xf32>
    %21 = math.exp %20 : vector<4x768xf32>
    %cst_6 = arith.constant dense<0.000000e+00> : vector<768xf32>
    %22 = vector.multi_reduction <add>, %21, %cst_6 [0] : vector<4x768xf32> to vector<768xf32>
    %23 = vector.shape_cast %22 : vector<768xf32> to vector<1x768xf32>
    %24 = tpu.iota {dimensions = array<i32: 0>} : vector<4x768xi32>
    %c0_7 = arith.constant 0 : index
    %c0_8 = arith.constant 0 : index
    %25 = vector.load %arg3[%c0_7, %c0_8] : memref<1x768xi32, #tpu.memory_space<vmem>>, vector<1x768xi32>
    %26 = vector.broadcast %25 : vector<1x768xi32> to vector<4x768xi32>
    %27 = arith.cmpi eq, %24, %26 : vector<4x768xi32>
    %cst_9 = arith.constant 0.000000e+00 : f32
    %28 = vector.broadcast %cst_9 : f32 to vector<4x768xf32>
    %29 = arith.select %27, %16, %28 : vector<4x768xi1>, vector<4x768xf32>
    %cst_10 = arith.constant dense<0.000000e+00> : vector<768xf32>
    %30 = vector.multi_reduction <add>, %29, %cst_10 [0] : vector<4x768xf32> to vector<768xf32>
    %31 = vector.shape_cast %30 : vector<768xf32> to vector<1x768xf32>
    %32 = math.log %23 : vector<1x768xf32>
    %33 = arith.addf %18, %32 : vector<1x768xf32>
    %34 = arith.subf %33, %31 : vector<1x768xf32>
    %c0_11 = arith.constant 0 : index
    %c0_12 = arith.constant 0 : index
    %35 = vector.load %arg5[%c0_11, %c0_12] : memref<7x768xf32, #tpu.memory_space<vmem>>, vector<7x768xf32>
    %cst_13 = arith.constant 1.100000e-01 : f32
    %36 = vector.broadcast %cst_13 : f32 to vector<7x768xf32>
    %37 = arith.cmpf olt, %35, %36 : vector<7x768xf32>
    %cst_14 = arith.constant 4.5454545 : f32
    %38 = vector.broadcast %cst_14 : f32 to vector<7x768xf32>
    %39 = arith.mulf %38, %35 : vector<7x768xf32>
    %40 = arith.mulf %39, %35 : vector<7x768xf32>
    %cst_15 = arith.constant 5.500000e-02 : f32
    %41 = vector.broadcast %cst_15 : f32 to vector<7x768xf32>
    %42 = arith.subf %35, %41 : vector<7x768xf32>
    %43 = arith.select %37, %40, %42 : vector<7x768xi1>, vector<7x768xf32>
    %cst_16 = arith.constant dense<0.000000e+00> : vector<768xf32>
    %44 = vector.multi_reduction <add>, %43, %cst_16 [0] : vector<7x768xf32> to vector<768xf32>
    %45 = vector.shape_cast %44 : vector<768xf32> to vector<1x768xf32>
    %c0_17 = arith.constant 0 : index
    %c0_18 = arith.constant 0 : index
    %c0_19 = arith.constant 0 : index
    %46 = vector.load %arg6[%c0_17, %c0_18, %c0_19] : memref<1x4x768xf32, #tpu.memory_space<vmem>>, vector<1x1x768xf32>
    %47 = vector.shape_cast %46 : vector<1x1x768xf32> to vector<1x768xf32>
    %cst_20 = arith.constant 0.000000e+00 : f32
    %48 = vector.broadcast %cst_20 : f32 to vector<1x768xf32>
    %49 = arith.select %15, %34, %48 : vector<1x768xi1>, vector<1x768xf32>
    %50 = arith.addf %47, %49 : vector<1x768xf32>
    %c0_21 = arith.constant 0 : index
    %c0_22 = arith.constant 0 : index
    %c0_23 = arith.constant 0 : index
    %51 = vector.load %arg6[%c0_21, %c0_22, %c0_23] : memref<1x4x768xf32, #tpu.memory_space<vmem>>, vector<1x1x768xf32>
    %52 = vector.shape_cast %51 : vector<1x1x768xf32> to vector<1x768xf32>
    %53 = vector.shape_cast %50 : vector<1x768xf32> to vector<1x1x768xf32>
    tpu.vector_store %arg6[%c0_21, %c0_22, %c0_23], %53 {strides = array<i32>} : memref<1x4x768xf32, #tpu.memory_space<vmem>>, vector<1x1x768xf32>,
    %c0_24 = arith.constant 0 : index
    %c1 = arith.constant 1 : index
    %c0_25 = arith.constant 0 : index
    %54 = vector.load %arg6[%c0_24, %c1, %c0_25] : memref<1x4x768xf32, #tpu.memory_space<vmem>>, vector<1x1x768xf32>
    %55 = vector.shape_cast %54 : vector<1x1x768xf32> to vector<1x768xf32>
    %56 = arith.extui %15 : vector<1x768xi1> to vector<1x768xi32>
    %57 = arith.sitofp %56 : vector<1x768xi32> to vector<1x768xf32>
    %58 = arith.addf %55, %57 : vector<1x768xf32>
    %c0_26 = arith.constant 0 : index
    %c1_27 = arith.constant 1 : index
    %c0_28 = arith.constant 0 : index
    %59 = vector.load %arg6[%c0_26, %c1_27, %c0_28] : memref<1x4x768xf32, #tpu.memory_space<vmem>>, vector<1x1x768xf32>
    %60 = vector.shape_cast %59 : vector<1x1x768xf32> to vector<1x768xf32>
    %61 = vector.shape_cast %58 : vector<1x768xf32> to vector<1x1x768xf32>
    tpu.vector_store %arg6[%c0_26, %c1_27, %c0_28], %61 {strides = array<i32>} : memref<1x4x768xf32, #tpu.memory_space<vmem>>, vector<1x1x768xf32>,
    %c0_29 = arith.constant 0 : index
    %c2 = arith.constant 2 : index
    %c0_30 = arith.constant 0 : index
    %62 = vector.load %arg6[%c0_29, %c2, %c0_30] : memref<1x4x768xf32, #tpu.memory_space<vmem>>, vector<1x1x768xf32>
    %63 = vector.shape_cast %62 : vector<1x1x768xf32> to vector<1x768xf32>
    %cst_31 = arith.constant 0.000000e+00 : f32
    %64 = vector.broadcast %cst_31 : f32 to vector<1x768xf32>
    %65 = arith.select %10, %45, %64 : vector<1x768xi1>, vector<1x768xf32>
    %66 = arith.mulf %65, %13 : vector<1x768xf32>
    %67 = arith.addf %63, %66 : vector<1x768xf32>
    %c0_32 = arith.constant 0 : index
    %c2_33 = arith.constant 2 : index
    %c0_34 = arith.constant 0 : index
    %68 = vector.load %arg6[%c0_32, %c2_33, %c0_34] : memref<1x4x768xf32, #tpu.memory_space<vmem>>, vector<1x1x768xf32>
    %69 = vector.shape_cast %68 : vector<1x1x768xf32> to vector<1x768xf32>
    %70 = vector.shape_cast %67 : vector<1x768xf32> to vector<1x1x768xf32>
    tpu.vector_store %arg6[%c0_32, %c2_33, %c0_34], %70 {strides = array<i32>} : memref<1x4x768xf32, #tpu.memory_space<vmem>>, vector<1x1x768xf32>,
    %c0_35 = arith.constant 0 : index
    %c3 = arith.constant 3 : index
    %c0_36 = arith.constant 0 : index
    %71 = vector.load %arg6[%c0_35, %c3, %c0_36] : memref<1x4x768xf32, #tpu.memory_space<vmem>>, vector<1x1x768xf32>
    %72 = vector.shape_cast %71 : vector<1x1x768xf32> to vector<1x768xf32>
    %73 = arith.addf %72, %13 : vector<1x768xf32>
    %c0_37 = arith.constant 0 : index
    %c3_38 = arith.constant 3 : index
    %c0_39 = arith.constant 0 : index
    %74 = vector.load %arg6[%c0_37, %c3_38, %c0_39] : memref<1x4x768xf32, #tpu.memory_space<vmem>>, vector<1x1x768xf32>
    %75 = vector.shape_cast %74 : vector<1x1x768xf32> to vector<1x768xf32>
    %76 = vector.shape_cast %73 : vector<1x768xf32> to vector<1x1x768xf32>
    tpu.vector_store %arg6[%c0_37, %c3_38, %c0_39], %76 {strides = array<i32>} : memref<1x4x768xf32, #tpu.memory_space<vmem>>, vector<1x1x768xf32>,
    return
  }
  func.func @transform_0(%arg0: i32, %arg1: i32) -> (i32, i32) {
    %c1_i32 = arith.constant 1 : i32
    %0 = arith.muli %arg0, %c1_i32 : i32
    %1 = arith.addi %0, %arg1 : i32
    %c1_i32_0 = arith.constant 1 : i32
    %2 = arith.minsi %1, %c1_i32_0 : i32
    %c0_i32 = arith.constant 0 : i32
    %c0_i32_1 = arith.constant 0 : i32
    return %c0_i32, %2 : i32, i32
  }
  func.func @transform_1(%arg0: i32, %arg1: i32) -> (i32, i32) {
    %c1_i32 = arith.constant 1 : i32
    %0 = arith.muli %arg0, %c1_i32 : i32
    %1 = arith.addi %0, %arg1 : i32
    %c1_i32_0 = arith.constant 1 : i32
    %2 = arith.minsi %1, %c1_i32_0 : i32
    %c0_i32 = arith.constant 0 : i32
    %c0_i32_1 = arith.constant 0 : i32
    return %c0_i32, %2 : i32, i32
  }
  func.func @transform_2(%arg0: i32, %arg1: i32) -> (i32, i32) {
    %c1_i32 = arith.constant 1 : i32
    %0 = arith.muli %arg0, %c1_i32 : i32
    %1 = arith.addi %0, %arg1 : i32
    %c1_i32_0 = arith.constant 1 : i32
    %2 = arith.minsi %1, %c1_i32_0 : i32
    %c0_i32 = arith.constant 0 : i32
    %c0_i32_1 = arith.constant 0 : i32
    return %c0_i32, %2 : i32, i32
  }
  func.func @transform_3(%arg0: i32, %arg1: i32) -> (i32, i32) {
    %c1_i32 = arith.constant 1 : i32
    %0 = arith.muli %arg0, %c1_i32 : i32
    %1 = arith.addi %0, %arg1 : i32
    %c1_i32_0 = arith.constant 1 : i32
    %2 = arith.minsi %1, %c1_i32_0 : i32
    %c0_i32 = arith.constant 0 : i32
    %c0_i32_1 = arith.constant 0 : i32
    return %c0_i32, %2 : i32, i32
  }
  func.func @transform_4(%arg0: i32, %arg1: i32) -> (i32, i32, i32) {
    %c0_i32 = arith.constant 0 : i32
    %c0_i32_0 = arith.constant 0 : i32
    %c0_i32_1 = arith.constant 0 : i32
    return %arg0, %c0_i32, %c0_i32_0 : i32, i32, i32
  }
}

</mosaic_0001>

<bundles_post_ra>
// kernel: radar_pillars_loss.1
= control target key start
LH: loop header
LB: loop body
LE: loop exit
PB: predicated region body
PF: predicated region fallthrough
CT: control target
= control target key end

     0   :  { %s1277_s15 = smov 0   ;;  %s1279_s16 = smov 0   ;;  %s1622_s0 = inlined_call_operand.vmem [shape: f32[4,800], index: 0, kind: input, shape index: {}]   ;;  %s1623_s1 = inlined_call_operand.vmem [shape: s32[1,800], index: 1, kind: input, shape index: {}]   ;;  %s1624_s2 = inlined_call_operand.vmem [shape: f32[1,800], index: 2, kind: input, shape index: {}]   ;;  %s1625_s3 = inlined_call_operand.vmem [shape: f32[7,800], index: 3, kind: input, shape index: {}]   ;;  %s1626_s4 = inlined_call_operand.vmem [shape: f32[2,4,768], index: 4, kind: output, shape index: {}]  }
   0x1   :  { %s1281_s17 = smov 0  }
   0x2 LB: > { %s26_s18 = sadd.s32 1, %s1244_s16  ;;  %p1154_p0 = scmp.ge.s32.totalorder %s1248_s17, 1  ;;  %s1248_s17 = sphi %s1281_s17, %s14_s17   ;;  %s1244_s16 = sphi %s1279_s16, %s1638_s16   ;;  %s1240_s15 = sphi %s1277_s15, %s1637_s15  }
   0x3   : > { %p28_p1 = scmp.ge.s32.totalorder %s26_s18, 2  ;;  %p286_p2 = scmp.lt.s32.totalorder %s1248_s17, 3 }
   0x5   : > { %s1640_s18 = smov (%p28_p1, %s26_s18), 0  ;;  %p287_p3 = pnand %p1154_p0, %p286_p2 }
   0x6   : > { %p354_p4 = scmp.lt.s32.totalorder (!%p287_p3), %s1240_s15, 1  ;;  %v444_v0 = vlaneseq (!%p287_p3)  ;;  %s451_s19 = smul.u32 (!%p287_p3), 768, %s1240_s15  ;;  %v1250_v11 = vmov (!%p287_p3), 0.0   ;;  %vm521_vm0 = vcmask (!%p287_p3), 1043456   ;;  %v1251_v18 = vmov (!%p287_p3), 1966171168  }
   0x7   : > { %290 = sbr.rel (%p287_p3) target bundleno = 122 (0x7a), region = 36  ;;  %v1327_v19 = vunpack.c.l.s4 (!%p287_p3), %v1251_v18 }
   0x8   : > { %v445_v1 = vand.u32 (!%p287_p3), 127, %v444_v0  ;;  %v452_v2 = vstv (!%p287_p3), %s451_s19  ;;  %v1297_v8 = vshrl.u32 (!%p287_p3), %v444_v0, 7 }
   0x9   : > { %v838_v42 = vunpack.c.0.s8 (!%p287_p3), %v1327_v19 }
   0xa   : > { %v446_v3 = vadd.s32 (!%p287_p3), 128, %v445_v1  ;;  %v447_v4 = vadd.s32 (!%p287_p3), 256, %v445_v1  ;;  %v448_v5 = vadd.s32 (!%p287_p3), 384, %v445_v1  ;;  %v449_v6 = vadd.s32 (!%p287_p3), 512, %v445_v1 }
   0xb   : > { %v450_v7 = vadd.s32 (!%p287_p3), 640, %v445_v1  ;;  %v1304_v9 = vadd.s32 (!%p287_p3), %v452_v2, %v445_v1  ;;  %v469_v16 = vsub.s32 (!%p287_p3), 0, %v1297_v8  ;;  %v473_v17 = vsub.s32 (!%p287_p3), 1, %v1297_v8 }
   0xc   : > { %v1306_v10 = vadd.s32 (!%p287_p3), %v452_v2, %v446_v3  ;;  %v1316_v12 = vadd.s32 (!%p287_p3), %v452_v2, %v447_v4  ;;  %v1318_v13 = vadd.s32 (!%p287_p3), %v452_v2, %v448_v5  ;;  %v1320_v14 = vadd.s32 (!%p287_p3), %v452_v2, %v449_v6 }
   0xd   : > { %v1322_v15 = vadd.s32 (!%p287_p3), %v452_v2, %v450_v7  ;;  %vm459_vm1 = vcmp.lt.s32.totalorder (!%p287_p3), %v1304_v9, 800  ;;  %v477_v20 = vsub.s32 (!%p287_p3), 2, %v1297_v8  ;;  %v481_v21 = vsub.s32 (!%p287_p3), 3, %v1297_v8 }
   0xe   : > { %s1642_s15 = smov (!%p354_p4, %s1240_s15), 1  ;;  %vm460_vm2 = vcmp.lt.s32.totalorder %v1306_v10, 800  ;;  %vm1630_vm3 = vcmp.lt.s32.totalorder %v1316_v12, 800  ;;  %vm1629_vm4 = vcmp.lt.s32.totalorder %v1318_v13, 800  ;;  %vm1628_vm5 = vcmp.lt.s32.totalorder %v1320_v14, 800 }
   0xf   : > { %s356_s20 = smul.u32 6, %s1642_s15  ;;  %vm1627_vm6 = vcmp.lt.s32.totalorder %v1322_v15, 800  ;;  %v485_v25 = vsub.s32 4, %v1297_v8  ;;  %v489_v26 = vsub.s32 5, %v1297_v8 }
  0x10   : > { %s1178_s21 = smul.u32 24, %s1642_s15 }
  0x11   : > { %p361_p5 = scmp.lt.s32.totalorder %s356_s20, 6 }
  0x12   : > { %s1302_s24 = scalar_lea.vmem %s1626_s4, %s1178_s21 }
  0x13   : > { %s1644_s20 = smov (!%p361_p5, %s356_s20), 6  ;;  %440 = vst [vmem:[%s1302_s24] sm:$0xff] %v1250_v11  ;;  %441 = vst [vmem:[%s1302_s24 + $0x8] sm:$0xff] %v1250_v11 }
  0x14   : > { %442 = vst [vmem:[%s1302_s24 + $0x10] sm:$0xff] %v1250_v11  ;;  %s1155_s25 = sshll.u32 %s1644_s20, 2  ;;  %s402_s5 = scalar_lea.vmem %s1624_s2, %s1644_s20 }
  0x15   : > { %s364_s28 = scalar_lea.vmem %s1622_s0, %s1155_s25  ;;  %v465_v24 = vld [vmem:[%s402_s5] sm:$0x3f]  ;;  %s383_s8 = scalar_lea.vmem %s1623_s1, %s1644_s20 }
  0x16   : > { %v1344_v22 = vld [vmem:[%s364_s28] sm:$0xff]  ;;  %v1346_v23 = vld [vmem:[%s364_s28 + $0x8] sm:$0xff]  ;;  %v1350_v27 = vld [vmem:[%s364_s28 + $0x10] sm:$0xff]  ;;  %v470_v30 = vrot.slane %v465_v24, %v469_v16  ;;  %v474_v31 = vrot.slane %v465_v24, %v473_v17  ;;  %v478_v32 = vrot.slane %v465_v24, %v477_v20  ;;  %v482_v33 = vrot.slane %v465_v24, %v481_v21  ;;  %s1156_s9 = sshll.u32 %s1644_s20, 3 }
  0x17   : > { %v1354_v28 = vcombine.high %v1344_v22, %v1344_v22  ;;  %v522_v29 = vsel %vm521_vm0, %v1344_v22, -inf  ;;  %v486_v34 = vrot.slane %v465_v24, %v485_v25  ;;  %v490_v35 = vrot.slane %v465_v24, %v489_v26  ;;  %v638_v51 = vld [vmem:[%s383_s8] sm:$0x3f]  ;;  %s1499_s12 = scalar_lea.vmem %s1625_s3, %s1156_s9 }
  0x18   : > { %v1360_v36 = vcombine.high %v1346_v23, %v1346_v23  ;;  %v523_v37 = vrot.slane %v522_v29, 4  ;;  %v1368_v38 = vcombine.high %v1350_v27, %v1350_v27  ;;  %v1374_v40 = vsel %vm459_vm1, %v470_v30, 0.0 }
  0x19   : > { %v529_v39 = vsel %vm521_vm0, %v1354_v28, -inf  ;;  %v1378_v41 = vsel %vm460_vm2, %v474_v31, 0.0  ;;  %v1383_v43 = vsel %vm1630_vm3, %v478_v32, 0.0  ;;  %v1387_v44 = vsel %vm1629_vm4, %v482_v33, 0.0 }
  0x1a   : > { %v1391_v45 = vsel %vm1628_vm5, %v486_v34, 0.0  ;;  %v1395_v46 = vsel %vm1627_vm6, %v490_v35, 0.0  ;;  %v524_v47 = vmax.f32 %v522_v29, %v523_v37  ;;  %v530_v48 = vrot.slane %v529_v39, 4 }
  0x1b   : > { %v536_v49 = vsel %vm521_vm0, %v1346_v23, -inf  ;;  %v543_v50 = vsel %vm521_vm0, %v1360_v36, -inf  ;;  %v550_v54 = vsel %vm521_vm0, %v1350_v27, -inf  ;;  %v557_v55 = vsel %vm521_vm0, %v1368_v38, -inf }
  0x1c   : > { %v537_v52 = vrot.slane %v536_v49, 4  ;;  %v544_v53 = vrot.slane %v543_v50, 4  ;;  %v525_v56 = vrot.slane %v524_v47, 2  ;;  %v531_v57 = vmax.f32 %v529_v39, %v530_v48 }
  0x1d   : > { %v551_v58 = vrot.slane %v550_v54, 4  ;;  %v558_v59 = vrot.slane %v557_v55, 4  ;;  %v642_v62 = vrot.slane %v638_v51, %v469_v16  ;;  %v646_v63 = vrot.slane %v638_v51, %v473_v17 }
  0x1e   : > { %v538_v60 = vmax.f32 %v536_v49, %v537_v52  ;;  %v545_v61 = vmax.f32 %v543_v50, %v544_v53  ;;  %v526_v1 = vmax.f32 %v524_v47, %v525_v56  ;;  %v532_v2 = vrot.slane %v531_v57, 2 }
  0x1f   : > { %v552_v3 = vmax.f32 %v550_v54, %v551_v58  ;;  %v559_v4 = vmax.f32 %v557_v55, %v558_v59  ;;  %v650_v7 = vrot.slane %v638_v51, %v477_v20  ;;  %v654_v18 = vrot.slane %v638_v51, %v481_v21 }
  0x20   : > { %v539_v5 = vrot.slane %v538_v60, 2  ;;  %v546_v6 = vrot.slane %v545_v61, 2  ;;  %v527_v24 = vrot.slane %v526_v1, 1  ;;  %v533_v29 = vmax.f32 %v531_v57, %v532_v2 }
  0x21   : > { %v553_v30 = vrot.slane %v552_v3, 2  ;;  %v560_v31 = vrot.slane %v559_v4, 2  ;;  %v658_v34 = vrot.slane %v638_v51, %v485_v25  ;;  %v662_v35 = vrot.slane %v638_v51, %v489_v26 }
  0x22   : > { %v540_v32 = vmax.f32 %v538_v60, %v539_v5  ;;  %v547_v33 = vmax.f32 %v545_v61, %v546_v6  ;;  %v1405_v37 = vmax.f32 %v526_v1, %v527_v24  ;;  %v534_v16 = vrot.slane %v533_v29, 1 }
  0x23   : > { %v554_v17 = vmax.f32 %v552_v3, %v553_v30  ;;  %v561_v39 = vmax.f32 %v559_v4, %v560_v31  ;;  %vm663_vm7 = vcmp.eq.s32.totalorder %v1297_v8, %v642_v62  ;;  %vm664_vm8 = vcmp.eq.s32.totalorder %v1297_v8, %v646_v63 }
  0x24   : > { %v541_v47 = vrot.slane %v540_v32, 1  ;;  %v548_v48 = vrot.slane %v547_v33, 1  ;;  %v1409_v20 = vmax.f32 %v533_v29, %v534_v16  ;;  %vm665_vm9 = vcmp.eq.s32.totalorder %v1297_v8, %v650_v7 }
  0x25   : > { %v555_v21 = vrot.slane %v554_v17, 1  ;;  %v562_v49 = vrot.slane %v561_v39, 1  ;;  %vm503_vm10 = vcmp.gt.f32.partialorder %v1374_v40, 0.0  ;;  %vm504_vm11 = vcmp.gt.f32.partialorder %v1378_v41, 0.0 }
  0x26   : > { %v1414_v25 = vmax.f32 %v540_v32, %v541_v47  ;;  %v1416_v26 = vmax.f32 %v547_v33, %v548_v48  ;;  %vm666_vm12 = vcmp.eq.s32.totalorder %v1297_v8, %v654_v18  ;;  %vm667_vm13 = vcmp.eq.s32.totalorder %v1297_v8, %v658_v34 }
  0x27   : > { %v1420_v50 = vmax.f32 %v554_v17, %v555_v21  ;;  %v1422_v51 = vmax.f32 %v561_v39, %v562_v49  ;;  %v570_v52 = vcombine.low %v1405_v37, %v1409_v20  ;;  %vm668_vm14 = vcmp.eq.s32.totalorder %v1297_v8, %v662_v35 }
  0x28   : > { %vm505_vm15 = vcmp.gt.f32.partialorder %v1383_v43, 0.0  ;;  %vm506_vm6 = vcmp.gt.f32.partialorder %v1387_v44, 0.0  ;;  %v571_v53 = vcombine.low %v1414_v25, %v1416_v26  ;;  %v669_v54 = vsel %vm663_vm7, %v1344_v22, 0.0 }
  0x29   : > { %v670_v55 = vsel %vm664_vm8, %v1354_v28, 0.0  ;;  %v671_v56 = vsel %vm665_vm9, %v1346_v23, 0.0  ;;  %v572_v57 = vcombine.low %v1420_v50, %v1422_v51  ;;  %v576_v58 = vsub.f32 %v1344_v22, %v570_v52 }
  0x2a   : > { %v672_v59 = vsel %vm666_vm12, %v1360_v36, 0.0  ;;  %v673_v60 = vsel %vm667_vm13, %v1350_v27, 0.0  ;;  %vm507_vm5 = vcmp.gt.f32.partialorder %v1391_v45, 0.0  ;;  %vm508_vm7 = vcmp.gt.f32.partialorder %v1395_v46, 0.0 }
  0x2b   : > { %v577_v61 = vsub.f32 %v1346_v23, %v571_v53  ;;  %v674_v28 = vsel %vm668_vm14, %v1368_v38, 0.0  ;;  %v675_v62 = vsel %vm521_vm0, %v669_v54, 0.0  ;;  %v682_v63 = vsel %vm521_vm0, %v670_v55, 0.0 }
  0x2c   : > { %v578_v1 = vsub.f32 %v1350_v27, %v572_v57  ;;  %v579_v2 = vmul.f32 1.442695, %v576_v58  ;;  %v676_v22 = vrot.slane %v675_v62, 4  ;;  %v683_v3 = vrot.slane %v682_v63, 4 }
  0x2d   : > { %v581_v36 = vmul.f32 1.442695, %v577_v61  ;;  %v689_v4 = vsel %vm521_vm0, %v671_v56, 0.0  ;;  %v696_v5 = vsel %vm521_vm0, %v672_v59, 0.0  ;;  %v703_v6 = vsel %vm521_vm0, %v673_v60, 0.0 }
  0x2e   : > { %1208 = vpow2.f32 %v579_v2  ;;  %v583_v23 = vmul.f32 1.442695, %v578_v1  ;;  %v677_v7 = vadd.f32 %v676_v22, %v675_v62  ;;  %v684_v38 = vadd.f32 %v683_v3, %v682_v63 }
  0x2f   : > { %1210 = vpow2.f32 %v581_v36  ;;  %v690_v18 = vrot.slane %v689_v4, 4  ;;  %v697_v24 = vrot.slane %v696_v5, 4  ;;  %v704_v29 = vrot.slane %v703_v6, 4 }
  0x30   : > { %1212 = vpow2.f32 %v583_v23  ;;  %v678_v27 = vrot.slane %v677_v7, 2  ;;  %v685_v30 = vrot.slane %v684_v38, 2  ;;  %v710_v31 = vsel %vm521_vm0, %v674_v28, 0.0 }
  0x31   : > { %v691_v32 = vadd.f32 %v690_v18, %v689_v4  ;;  %v698_v33 = vadd.f32 %v697_v24, %v696_v5  ;;  %v705_v34 = vadd.f32 %v704_v29, %v703_v6  ;;  %v711_v35 = vrot.slane %v710_v31, 4 }
  0x32   : > { %v679_v16 = vadd.f32 %v678_v27, %v677_v7  ;;  %v686_v17 = vadd.f32 %v685_v30, %v684_v38  ;;  %v1165_v39 = vsel %vm503_vm10, 1.0, %v1250_v11  ;;  %v1166_v47 = vsel %vm504_vm11, 1.0, %v1250_v11 }
  0x33   : > { %v692_v48 = vrot.slane %v691_v32, 2  ;;  %v699_v21 = vrot.slane %v698_v33, 2  ;;  %v706_v49 = vrot.slane %v705_v34, 2  ;;  %v712_v52 = vadd.f32 %v711_v35, %v710_v31 }
  0x34   : > { %v680_v53 = vrot.slane %v679_v16, 1  ;;  %v687_v54 = vrot.slane %v686_v17, 1  ;;  %v1167_v55 = vsel %vm505_vm15, 1.0, %v1250_v11  ;;  %v1168_v56 = vsel %vm506_vm6, 1.0, %v1250_v11 }
  0x35   : > { %v693_v57 = vadd.f32 %v692_v48, %v691_v32  ;;  %v700_v58 = vadd.f32 %v699_v21, %v698_v33  ;;  %v707_v59 = vadd.f32 %v706_v49, %v705_v34  ;;  %v713_v60 = vrot.slane %v712_v52, 2 }
  0x36   : > { %v1468_v61 = vadd.f32 %v680_v53, %v679_v16  ;;  %v1473_v28 = vsub.s32 %v838_v42, %v1297_v8  ;;  %v1169_v62 = vsel %vm507_vm5, 1.0, %v1250_v11  ;;  %v1170_v63 = vsel %vm508_vm7, 1.0, %v1250_v11 }
  0x37   : > { %v1481_v1 = vadd.f32 %v687_v54, %v686_v17  ;;  %v694_v2 = vrot.slane %v693_v57, 1  ;;  %v701_v22 = vrot.slane %v700_v58, 1  ;;  %v708_v3 = vrot.slane %v707_v59, 1 }
  0x38   : > { %v1209_v36 = vpop.eup %1208  ;;  %v714_v4 = vadd.f32 %v713_v60, %v712_v52  ;;  %v900_v5 = vcombine.low %v1165_v39, %v1166_v47  ;;  %v901_v6 = vcombine.low %v1167_v55, %v1168_v56  ;;  %v902_v8 = vcombine.low %v1169_v62, %v1170_v63 }
  0x39   : > { %v1211_v19 = vpop.eup %1210  ;;  %v588_v42 = vcombine.high %v1209_v36, %v1209_v36  ;;  %v594_v23 = vsel %vm521_vm0, %v1209_v36, 0.0  ;;  %v1484_v7 = vadd.f32 %v694_v2, %v693_v57  ;;  %v1486_v38 = vadd.f32 %v701_v22, %v700_v58 }
  0x3a   : > { %v1213_v11 = vpop.eup %1212  ;;  %v589_v18 = vcombine.high %v1211_v19, %v1211_v19  ;;  %v595_v24 = vrot.slane %v594_v23, 4  ;;  %v608_v29 = vsel %vm521_vm0, %v1211_v19, 0.0  ;;  %v1489_v27 = vadd.f32 %v708_v3, %v707_v59 }
  0x3b   : > { %v590_v30 = vcombine.high %v1213_v11, %v1213_v11  ;;  %v601_v31 = vsel %vm521_vm0, %v588_v42, 0.0  ;;  %v609_v32 = vrot.slane %v608_v29, 4  ;;  %v622_v33 = vsel %vm521_vm0, %v1213_v11, 0.0  ;;  %v741_v11 = vld [vmem:[%s1499_s12] sm:$0x7f] }
  0x3c   : > { %v596_v34 = vadd.f32 %v595_v24, %v594_v23  ;;  %v602_v35 = vrot.slane %v601_v31, 4  ;;  %v615_v16 = vsel %vm521_vm0, %v589_v18, 0.0  ;;  %v623_v17 = vrot.slane %v622_v33, 4 }
  0x3d   : > { %v610_v39 = vadd.f32 %v609_v32, %v608_v29  ;;  %v616_v47 = vrot.slane %v615_v16, 4  ;;  %v629_v48 = vsel %vm521_vm0, %v590_v30, 0.0  ;;  %v715_v21 = vrot.slane %v714_v4, 1 }
  0x3e   : > { %v597_v49 = vrot.slane %v596_v34, 2  ;;  %v603_v52 = vadd.f32 %v602_v35, %v601_v31  ;;  %v624_v53 = vadd.f32 %v623_v17, %v622_v33  ;;  %v630_v54 = vrot.slane %v629_v48, 4  ;;  %v742_v33 = vld [vmem:[%s1499_s12 + $0x8] sm:$0x7f] }
  0x3f   : > { %v611_v55 = vrot.slane %v610_v39, 2  ;;  %v617_v56 = vadd.f32 %v616_v47, %v615_v16  ;;  %v1501_v57 = vadd.f32 %v715_v21, %v714_v4  ;;  %v909_v58 = vrot.slane %v900_v5, %v1473_v28  ;;  %v1164_v47 = vld [vmem:[%s1302_s24 + $0x1] ss:$4 sm:$0x3f] }
  0x40   : > { %v598_v59 = vadd.f32 %v597_v49, %v596_v34  ;;  %v604_v60 = vrot.slane %v603_v52, 2  ;;  %v625_v62 = vrot.slane %v624_v53, 2  ;;  %v631_v63 = vadd.f32 %v630_v54, %v629_v48  ;;  %v743_v48 = vld [vmem:[%s1499_s12 + $0x10] sm:$0x7f] }
  0x41   : > { %vm1505_vm0 = vcmp.lt.s32.totalorder %v444_v0, 768  ;;  %v612_v22 = vadd.f32 %v611_v55, %v610_v39  ;;  %v618_v3 = vrot.slane %v617_v56, 2  ;;  %v916_v36 = vrot.slane %v901_v6, %v1473_v28  ;;  %v746_v55 = vld [vmem:[%s1499_s12 + $0x28] sm:$0x7f] }
  0x42   : > { %v923_v19 = vrot.slane %v902_v8, %v1473_v28  ;;  %v599_v4 = vrot.slane %v598_v59, 1  ;;  %v605_v42 = vadd.f32 %v604_v60, %v603_v52  ;;  %v626_v23 = vadd.f32 %v625_v62, %v624_v53  ;;  %v744_v52 = vld [vmem:[%s1499_s12 + $0x18] sm:$0x7f]  ;;  %v745_v53 = vld [vmem:[%s1499_s12 + $0x20] sm:$0x7f] }
  0x43   : > { %v632_v5 = vrot.slane %v631_v63, 2  ;;  %v613_v18 = vrot.slane %v612_v22, 1  ;;  %v619_v24 = vadd.f32 %v618_v3, %v617_v56  ;;  %v924_v29 = vcombine.low %v909_v58, %v916_v36 }
  0x44   : > { %v938_v0 = vrot.slane %v923_v19, %v1473_v28  ;;  %vm747_vm8 = vcmp.lt.f32.partialorder %v741_v11, 0.11  ;;  %v600_v30 = vadd.f32 %v599_v4, %v598_v59  ;;  %v606_v31 = vrot.slane %v605_v42, 1 }
  0x45   : > { %v627_v32 = vrot.slane %v626_v23, 1  ;;  %v633_v6 = vadd.f32 %v632_v5, %v631_v63  ;;  %vm777_vm9 = vcmask 1046528   ;;  %v614_v8 = vadd.f32 %v613_v18, %v612_v22 }
  0x46   : > { %v620_v34 = vrot.slane %v619_v24, 1  ;;  %v931_v35 = vrot.slane %v924_v29, %v1473_v28  ;;  %vm748_vm12 = vcmp.lt.f32.partialorder %v742_v33, 0.11  ;;  %v607_v16 = vadd.f32 %v606_v31, %v605_v42 }
  0x47   : > { %v628_v17 = vadd.f32 %v627_v32, %v626_v23  ;;  %v634_v39 = vrot.slane %v633_v6, 1  ;;  %1214 = vlog2.f32 %v600_v30  ;;  %vm749_vm13 = vcmp.lt.f32.partialorder %v743_v48, 0.11 }
  0x48   : > { %v621_v21 = vadd.f32 %v620_v34, %v619_v24  ;;  %1216 = vlog2.f32 %v614_v8  ;;  %v939_v49 = vcombine.low %v931_v35, %v938_v0  ;;  %vm750_vm14 = vcmp.lt.f32.partialorder %v744_v52, 0.11 }
  0x49   : > { %v635_v54 = vadd.f32 %v634_v39, %v633_v6  ;;  %1218 = vlog2.f32 %v607_v16  ;;  %vm751_vm4 = vcmp.lt.f32.partialorder %v745_v53, 0.11  ;;  %vm752_vm3 = vcmp.lt.f32.partialorder %v746_v55, 0.11 }
  0x4a   : > { %1220 = vlog2.f32 %v621_v21  ;;  %v941_v56 = vadd.f32 %v1164_v47, %v939_v49  ;;  %v753_v58 = vmul.f32 4.5454545, %v741_v11  ;;  %v754_v59 = vmul.f32 4.5454545, %v742_v33 }
  0x4b   : > { %1222 = vlog2.f32 %v628_v17  ;;  %v755_v60 = vmul.f32 4.5454545, %v743_v48  ;;  %v756_v62 = vmul.f32 4.5454545, %v744_v52  ;;  %v757_v63 = vmul.f32 4.5454545, %v745_v53 }
  0x4c   : > { %1224 = vlog2.f32 %v635_v54  ;;  %1171 = vst.msk [vmem:[%s1302_s24 + $0x1] ss:$4 sm:$0x3f] %vm1505_vm0, %v941_v56  ;;  %v758_v22 = vmul.f32 4.5454545, %v746_v55  ;;  %v759_v3 = vmul.f32 %v753_v58, %v741_v11  ;;  %v760_v36 = vmul.f32 %v754_v59, %v742_v33 }
  0x4d   : > { %v761_v19 = vmul.f32 %v755_v60, %v743_v48  ;;  %v762_v4 = vmul.f32 %v756_v62, %v744_v52  ;;  %v1158_v42 = vadd.f32 -0.055, %v741_v11  ;;  %v763_v23 = vmul.f32 %v757_v63, %v745_v53 }
  0x4e   : > { %v764_v5 = vmul.f32 %v758_v22, %v746_v55  ;;  %v1159_v18 = vadd.f32 -0.055, %v742_v33  ;;  %v1160_v24 = vadd.f32 -0.055, %v743_v48  ;;  %v1161_v29 = vadd.f32 -0.055, %v744_v52 }
  0x4f   : > { %v1162_v0 = vadd.f32 -0.055, %v745_v53  ;;  %v1163_v30 = vadd.f32 -0.055, %v746_v55  ;;  %v771_v31 = vsel %vm747_vm8, %v759_v3, %v1158_v42  ;;  %v1014_v34 = vcombine.low %v1374_v40, %v1378_v41 }
  0x50   : > { %v772_v32 = vsel %vm748_vm12, %v760_v36, %v1159_v18  ;;  %v773_v6 = vsel %vm749_vm13, %v761_v19, %v1160_v24  ;;  %v778_v8 = vsel %vm777_vm9, %v771_v31, 0.0  ;;  %v774_v16 = vsel %vm750_vm14, %v762_v4, %v1161_v29 }
  0x51   : > { %v1215_v35 = vpop.eup %1214  ;;  %v775_v17 = vsel %vm751_vm4, %v763_v23, %v1162_v0  ;;  %v776_v39 = vsel %vm752_vm3, %v764_v5, %v1163_v30  ;;  %v779_v47 = vrot.slane %v778_v8, 4  ;;  %v785_v33 = vsel %vm777_vm9, %v772_v32, 0.0 }
  0x52   : > { %v1217_v21 = vpop.eup %1216  ;;  %v718_v11 = vmul.f32 0.6931472, %v1215_v35  ;;  %v792_v48 = vsel %vm777_vm9, %v773_v6, 0.0  ;;  %v799_v49 = vsel %vm777_vm9, %v774_v16, 0.0  ;;  %v786_v59 = vrot.slane %v785_v33, 4 }
  0x53   : > { %v1219_v54 = vpop.eup %1218  ;;  %v722_v56 = vmul.f32 0.6931472, %v1217_v21  ;;  %v780_v58 = vadd.f32 %v779_v47, %v778_v8  ;;  %v793_v60 = vrot.slane %v792_v48, 4  ;;  %v800_v55 = vrot.slane %v799_v49, 4 }
  0x54   : > { %v1221_v52 = vpop.eup %1220  ;;  %v720_v62 = vmul.f32 0.6931472, %v1219_v54  ;;  %v729_v53 = vadd.f32 %v718_v11, %v1405_v37  ;;  %v806_v63 = vsel %vm777_vm9, %v775_v17, 0.0  ;;  %v787_v4 = vadd.f32 %v786_v59, %v785_v33 }
  0x55   : > { %v1223_v22 = vpop.eup %1222  ;;  %v724_v3 = vmul.f32 0.6931472, %v1221_v52  ;;  %v731_v36 = vadd.f32 %v722_v56, %v1414_v25  ;;  %v781_v19 = vrot.slane %v780_v58, 2  ;;  %v794_v24 = vadd.f32 %v793_v60, %v792_v48 }
  0x56   : > { %v1225_v42 = vpop.eup %1224  ;;  %v726_v23 = vmul.f32 0.6931472, %v1223_v22  ;;  %v730_v5 = vadd.f32 %v720_v62, %v1409_v20  ;;  %v735_v18 = vsub.f32 %v729_v53, %v1468_v61  ;;  %v788_v6 = vrot.slane %v787_v4, 2 }
  0x57   : > { %v728_v29 = vmul.f32 0.6931472, %v1225_v42  ;;  %v732_v0 = vadd.f32 %v724_v3, %v1416_v26  ;;  %v737_v37 = vsub.f32 %v731_v36, %v1484_v7  ;;  %v782_v30 = vadd.f32 %v781_v19, %v780_v58 }
  0x58   : > { %v733_v31 = vadd.f32 %v726_v23, %v1420_v50  ;;  %v736_v32 = vsub.f32 %v730_v5, %v1481_v1  ;;  %v821_v25 = vsel %vm503_vm10, %v735_v18, 0.0  ;;  %v789_v50 = vadd.f32 %v788_v6, %v787_v4  ;;  %v820_v18 = vld [vmem:[%s1302_s24] ss:$4 sm:$0x3f] }
  0x59   : > { %v734_v8 = vadd.f32 %v728_v29, %v1422_v51  ;;  %v738_v20 = vsub.f32 %v732_v0, %v1486_v38  ;;  %v823_v61 = vsel %vm505_vm15, %v737_v37, 0.0  ;;  %v783_v35 = vrot.slane %v782_v30, 1 }
  0x5a   : > { %v739_v26 = vsub.f32 %v733_v31, %v1489_v27  ;;  %v822_v7 = vsel %vm504_vm11, %v736_v32, 0.0  ;;  %v795_v16 = vrot.slane %v794_v24, 2  ;;  %v790_v11 = vrot.slane %v789_v50, 1 }
  0x5b   : > { %v740_v1 = vsub.f32 %v734_v8, %v1501_v57  ;;  %v824_v17 = vsel %vm506_vm6, %v738_v20, 0.0  ;;  %v833_v47 = vcombine.low %v821_v25, %v822_v7  ;;  %v784_v51 = vadd.f32 %v783_v35, %v782_v30 }
  0x5c   : > { %v825_v38 = vsel %vm507_vm5, %v739_v26, 0.0  ;;  %v834_v21 = vcombine.low %v823_v61, %v824_v17  ;;  %v796_v33 = vadd.f32 %v795_v16, %v794_v24  ;;  %v801_v54 = vadd.f32 %v800_v55, %v799_v49 }
  0x5d   : > { %v826_v27 = vsel %vm508_vm7, %v740_v1, 0.0  ;;  %v842_v48 = vrot.slane %v833_v47, %v1473_v28  ;;  %v807_v56 = vrot.slane %v806_v63, 4  ;;  %v791_v59 = vadd.f32 %v790_v11, %v789_v50 }
  0x5e   : > { %v835_v58 = vcombine.low %v825_v38, %v826_v27  ;;  %v849_v57 = vrot.slane %v834_v21, %v1473_v28  ;;  %v797_v60 = vrot.slane %v796_v33, 1  ;;  %v802_v52 = vrot.slane %v801_v54, 2  ;;  %v1174_v38 = vld [vmem:[%s1302_s24 + $0x3] ss:$4 sm:$0x3f] }
  0x5f   : > { %v808_v62 = vadd.f32 %v807_v56, %v806_v63  ;;  %v813_v53 = vsel %vm777_vm9, %v776_v39, 0.0  ;;  %v945_v22 = vsel %vm459_vm1, %v784_v51, 0.0  ;;  %v946_v42 = vsel %vm460_vm2, %v791_v59, 0.0 }
  0x60   : > { %v856_v3 = vrot.slane %v835_v58, %v1473_v28  ;;  %v857_v36 = vcombine.low %v842_v48, %v849_v57  ;;  %v798_v19 = vadd.f32 %v797_v60, %v796_v33  ;;  %v814_v4 = vrot.slane %v813_v53, 4  ;;  %v1172_v58 = vld [vmem:[%s1302_s24 + $0x2] ss:$4 sm:$0x3f] }
  0x61   : > { %v803_v49 = vadd.f32 %v802_v52, %v801_v54  ;;  %v809_v55 = vrot.slane %v808_v62, 2  ;;  %v951_v23 = vmul.f32 %v945_v22, %v1374_v40  ;;  %vm1633_vm3 = vcmp.lt.s32.totalorder %v1316_v12, 800 }
  0x62   : > { %v864_v5 = vrot.slane %v857_v36, %v1473_v28  ;;  %v871_v63 = vrot.slane %v856_v3, %v1473_v28  ;;  %v815_v39 = vadd.f32 %v814_v4, %v813_v53  ;;  %v947_v9 = vsel %vm1633_vm3, %v798_v19, 0.0 }
  0x63   : > { %v804_v24 = vrot.slane %v803_v49, 1  ;;  %v810_v29 = vadd.f32 %v809_v55, %v808_v62  ;;  %v952_v0 = vmul.f32 %v946_v42, %v1378_v41  ;;  %v953_v37 = vmul.f32 %v947_v9, %v1383_v43 }
  0x64   : > { %v872_v10 = vcombine.low %v864_v5, %v871_v63  ;;  %v816_v30 = vrot.slane %v815_v39, 2  ;;  %v1015_v31 = vcombine.low %v1383_v43, %v1387_v44  ;;  %v1016_v32 = vcombine.low %v1391_v45, %v1395_v46 }
  0x65   : > { %v805_v25 = vadd.f32 %v804_v24, %v803_v49  ;;  %v811_v6 = vrot.slane %v810_v29, 1  ;;  %v963_v12 = vcombine.low %v951_v23, %v952_v0  ;;  %v1023_v8 = vrot.slane %v1014_v34, %v1473_v28 }
  0x66   : > { %v874_v20 = vadd.f32 %v872_v10, %v820_v18  ;;  %v817_v61 = vadd.f32 %v816_v30, %v815_v39  ;;  %v1030_v35 = vrot.slane %v1015_v31, %v1473_v28  ;;  %v1037_v26 = vrot.slane %v1016_v32, %v1473_v28 }
  0x67   : > { %v812_v7 = vadd.f32 %v811_v6, %v810_v29  ;;  %vm1634_vm1 = vcmp.lt.s32.totalorder %v1318_v13, 800  ;;  %vm1635_vm2 = vcmp.lt.s32.totalorder %v1320_v14, 800  ;;  %v972_v47 = vrot.slane %v963_v12, %v1473_v28 }
  0x68   : > { %v948_v43 = vsel %vm1634_vm1, %v805_v25, 0.0  ;;  %879 = vst.msk [vmem:[%s1302_s24] ss:$4 sm:$0x3f] %vm1505_vm0, %v874_v20  ;;  %v818_v50 = vrot.slane %v817_v61, 1  ;;  %v1038_v1 = vcombine.low %v1023_v8, %v1030_v35  ;;  %v1052_v40 = vrot.slane %v1037_v26, %v1473_v28 }
  0x69   : > { %v954_v16 = vmul.f32 %v948_v43, %v1387_v44  ;;  %v949_v41 = vsel %vm1635_vm2, %v812_v7, 0.0  ;;  %vm1636_vm4 = vcmp.lt.s32.totalorder %v1322_v15, 800 }
  0x6a   : > { %v819_v34 = vadd.f32 %v818_v50, %v817_v61  ;;  %v1045_v13 = vrot.slane %v1038_v1, %v1473_v28  ;;  %v955_v51 = vmul.f32 %v949_v41, %v1391_v45 }
  0x6b   : > { %v964_v17 = vcombine.low %v953_v37, %v954_v16 }
  0x6c   : > { %v950_v44 = vsel %vm1636_vm4, %v819_v34, 0.0  ;;  %v1053_v11 = vcombine.low %v1045_v13, %v1052_v40 }
  0x6d   : > { %v979_v21 = vrot.slane %v964_v17, %v1473_v28  ;;  %v956_v14 = vmul.f32 %v950_v44, %v1395_v46 }
  0x6e   : > { %v1055_v27 = vadd.f32 %v1174_v38, %v1053_v11 }
  0x6f   : > { %v987_v33 = vcombine.low %v972_v47, %v979_v21  ;;  %v965_v48 = vcombine.low %v955_v51, %v956_v14 }
  0x70   : > { %1175 = vst.msk [vmem:[%s1302_s24 + $0x3] ss:$4 sm:$0x3f] %vm1505_vm0, %v1055_v27 }
  0x71   : > { %v986_v54 = vrot.slane %v965_v48, %v1473_v28  ;;  %v994_v45 = vrot.slane %v987_v33, %v1473_v28 }
  0x73   : > { %v1001_v56 = vrot.slane %v986_v54, %v1473_v28 }
  0x75   : > { %v1002_v15 = vcombine.low %v994_v45, %v1001_v56 }
  0x77   : > { %v1004_v57 = vadd.f32 %v1172_v58, %v1002_v15 }
  0x79   : > { %1173 = vst.msk [vmem:[%s1302_s24 + $0x2] ss:$4 sm:$0x3f] %vm1505_vm0, %v1004_v57 }
  0x7a PF: > { %s14_s17 = sadd.s32 1, %s1248_s17   ;;  %s1637_s15 = smov %s1244_s16 }
  0x7b   : > { %p11_p6 = scmp.ge.s32.totalorder %s14_s17, 4   ;;  %s1638_s16 = smov %s1640_s18 }
  0x7d   :  { %13 = sbr.rel (!%p11_p6) target bundleno = 2 (0x2), region = 82 }

</bundles_post_ra>
